<compile_context>
chip_gen: v7x
topology: tpu7x:2x2x1
jax: 0.10.0
libtpu: 0.0.40
codegen_flags: <defaults>
</compile_context>

<pallas_src>
import functools

import jax
import jax.numpy as jnp
from jax.experimental import pallas as pl
from jax.experimental.pallas import tpu as pltpu

_LANE = 128
_SUBLANE_F32 = 8


def _round_up(x, m):
    return (x + m - 1) // m * m


def _adapter_kernel(x_ref, wd_ref, bd_ref, wu_ref, bu_ref, o_ref, *, act_fn):
    # x_ref: (TN, H)  wd_ref: (H, B) bf16  bd_ref: (1, B) f32
    # wu_ref: (B, H) bf16  bu_ref: (1, H) f32  o_ref: (TN, H)
    x = x_ref[...]
    x_f32 = x.astype(jnp.float32)

    # down_project: bf16 MXU matmul with f32 accumulation.
    h = jnp.dot(x.astype(jnp.bfloat16), wd_ref[...],
                preferred_element_type=jnp.float32)
    # bias + activation in f32 (VPU / EUP).
    h = act_fn(h + bd_ref[...])

    # up_project: bf16 MXU matmul with f32 accumulation.
    y = jnp.dot(h.astype(jnp.bfloat16), wu_ref[...],
                preferred_element_type=jnp.float32)

    # bias + residual in f32, single cast at the store.
    o_ref[...] = (y + bu_ref[...] + x_f32).astype(o_ref.dtype)


_ACTIVATIONS = {
    "relu": lambda h: jnp.maximum(h, 0.0),
    "gelu": jax.nn.gelu,
    "tanh": jnp.tanh,
    "sigmoid": jax.nn.sigmoid,
}


def adapter_forward(hidden_states, w_down, b_down, w_up, b_up,
                    activation="relu"):
    """Fused adapter forward.

    hidden_states: (batch, seq, hidden)
    w_down: (hidden, bottleneck)   -- PyTorch Linear weight, pre-transposed
    b_down: (bottleneck,)
    w_up:   (bottleneck, hidden)
    b_up:   (hidden,)
    """
    batch, seq, hidden = hidden_states.shape
    bottleneck = w_down.shape[1]
    dtype = hidden_states.dtype
    n = batch * seq

    # ---- lane-align hidden & bottleneck with zero padding (exact) ----------
    H = _round_up(hidden, _LANE)
    B = _round_up(bottleneck, _LANE)

    x2d = hidden_states.reshape(n, hidden)
    if H != hidden:
        x2d = jnp.pad(x2d, ((0, 0), (0, H - hidden)))

    wd = jnp.pad(w_down, ((0, H - hidden), (0, B - bottleneck))
                 ).astype(jnp.bfloat16)
    wu = jnp.pad(w_up, ((0, B - bottleneck), (0, H - hidden))
                 ).astype(jnp.bfloat16)
    bd = jnp.pad(b_down, (0, B - bottleneck)).astype(jnp.float32).reshape(1, B)
    bu = jnp.pad(b_up, (0, H - hidden)).astype(jnp.float32).reshape(1, H)

    # ---- choose token tile TN: double-buffered in/out tiles + resident
    #      weights must fit a conservative VMEM budget (v7x has 64 MiB) ------
    dbytes = jnp.dtype(dtype).itemsize
    weight_bytes = 2 * H * B * 2 + (B + H) * 4          # bf16 weights + f32 biases
    budget = 36 * 1024 * 1024
    # per token row: in tile + out tile (each double-buffered) + f32 temporaries
    per_row = 2 * H * dbytes * 2 + (B + H) * 4
    tn = max(_SUBLANE_F32, (budget - weight_bytes) // max(per_row, 1))
    tn = min(tn, 1024, _round_up(n, _SUBLANE_F32))
    tn = max(_SUBLANE_F32, (tn // _SUBLANE_F32) * _SUBLANE_F32)

    n_pad = _round_up(n, tn)
    if n_pad != n:
        x2d = jnp.pad(x2d, ((0, n_pad - n), (0, 0)))

    grid = (n_pad // tn,)

    kernel = functools.partial(_adapter_kernel, act_fn=_ACTIVATIONS[activation])

    flops = 4 * n_pad * H * B                            # two matmuls
    bytes_accessed = 2 * n_pad * H * dbytes + weight_bytes
    cost = pl.CostEstimate(flops=flops, transcendentals=0,
                           bytes_accessed=bytes_accessed)

    vmem_limit = int(min(max(weight_bytes + 2 * tn * per_row + (16 << 20),
                             32 << 20),
                         56 << 20))

    out2d = pl.pallas_call(
        kernel,
        out_shape=jax.ShapeDtypeStruct((n_pad, H), dtype),
        grid_spec=pltpu.PrefetchScalarGridSpec(
            num_scalar_prefetch=0,
            grid=grid,
            in_specs=[
                pl.BlockSpec((tn, H), lambda i: (i, 0)),      # x tile
                pl.BlockSpec((H, B), lambda i: (0, 0)),       # w_down (resident)
                pl.BlockSpec((1, B), lambda i: (0, 0)),       # b_down (resident)
                pl.BlockSpec((B, H), lambda i: (0, 0)),       # w_up   (resident)
                pl.BlockSpec((1, H), lambda i: (0, 0)),       # b_up   (resident)
            ],
            out_specs=pl.BlockSpec((tn, H), lambda i: (i, 0)),
        ),
        compiler_params=pltpu.CompilerParams(
            dimension_semantics=("parallel",),
            vmem_limit_bytes=vmem_limit,
        ),
        cost_estimate=cost,
    )(x2d, wd, bd, wu, bu)

    out2d = out2d[:n, :hidden]
    return out2d.reshape(batch, seq, hidden)


if __name__ == "__main__":
    # adapter_config: hidden_size=32, bottleneck_dim=8, activation=nn.ReLU
    hidden_size = 32
    bottleneck_dim = 8
    batch, seq = 2, 8

    key = jax.random.PRNGKey(0)
    k_x, k_wd, k_bd, k_wu, k_bu = jax.random.split(key, 5)

    hidden_states = jax.random.normal(k_x, (batch, seq, hidden_size),
                                      jnp.float32)

    # torch.nn.init.normal_(param, 0.0, 1e-05) on weights AND biases.
    # PyTorch Linear weight is (out, in); we store the transpose (in, out).
    w_down = (jax.random.normal(k_wd, (bottleneck_dim, hidden_size),
                                jnp.float32) * 1e-5).T
    b_down = jax.random.normal(k_bd, (bottleneck_dim,), jnp.float32) * 1e-5
    w_up = (jax.random.normal(k_wu, (hidden_size, bottleneck_dim),
                              jnp.float32) * 1e-5).T
    b_up = jax.random.normal(k_bu, (hidden_size,), jnp.float32) * 1e-5

    out = adapter_forward(hidden_states, w_down, b_down, w_up, b_up,
                          activation="relu")
    out = jax.block_until_ready(out)

    # Reference check in plain JAX (f32).
    ref = (jnp.maximum(hidden_states @ w_down + b_down, 0.0) @ w_up
           + b_up + hidden_states)
    assert out.shape == hidden_states.shape
    assert jnp.allclose(out, ref, atol=1e-5), "mismatch vs reference"

    print("KERNEL_OK")
</pallas_src>

<mosaic_0001>
module attributes {stable_mosaic.version = 11 : i64} {
  func.func @_adapter_kernel(%arg0: i32, %arg1: memref<16x128xf32, #tpu.memory_space<vmem>>, %arg2: memref<128x128xbf16, #tpu.memory_space<vmem>>, %arg3: memref<1x128xf32, #tpu.memory_space<vmem>>, %arg4: memref<128x128xbf16, #tpu.memory_space<vmem>>, %arg5: memref<1x128xf32, #tpu.memory_space<vmem>>, %arg6: memref<16x128xf32, #tpu.memory_space<vmem>>) attributes {dimension_semantics = [#tpu.dimension_semantics<parallel>], iteration_bounds = array<i64: 1>, scalar_prefetch = 0 : i64, scratch_operands = 0 : i64, tpu.core_type = #tpu.core_type<tc>, window_params = [{transform_indices = @transform_0, window_bounds = array<i64: 16, 128>}, {pipeline_mode = #tpu.pipeline_mode<synchronous>, transform_indices = @transform_1, window_bounds = array<i64: 128, 128>}, {pipeline_mode = #tpu.pipeline_mode<synchronous>, transform_indices = @transform_2, window_bounds = array<i64: 1, 128>}, {pipeline_mode = #tpu.pipeline_mode<synchronous>, transform_indices = @transform_3, window_bounds = array<i64: 128, 128>}, {pipeline_mode = #tpu.pipeline_mode<synchronous>, transform_indices = @transform_4, window_bounds = array<i64: 1, 128>}, {transform_indices = @transform_5, window_bounds = array<i64: 16, 128>}]} {
    %c0 = arith.constant 0 : index
    %c0_0 = arith.constant 0 : index
    %0 = vector.load %arg1[%c0, %c0_0] : memref<16x128xf32, #tpu.memory_space<vmem>>, vector<16x128xf32>
    %1 = arith.truncf %0 : vector<16x128xf32> to vector<16x128xbf16>
    %c0_1 = arith.constant 0 : index
    %c0_2 = arith.constant 0 : index
    %2 = vector.load %arg2[%c0_1, %c0_2] : memref<128x128xbf16, #tpu.memory_space<vmem>>, vector<128x128xbf16>
    %cst = arith.constant dense<0.000000e+00> : vector<16x128xf32>
    %3 = tpu.matmul %1, %2, %cst {dimension_numbers = #tpu.dot_dimension_numbers<[1], [0], [0], [1], [0, 0, 1, 1], [], []>} : vector<16x128xbf16>, vector<128x128xbf16>, vector<16x128xf32> -> vector<16x128xf32>
    %c0_3 = arith.constant 0 : index
    %c0_4 = arith.constant 0 : index
    %4 = vector.load %arg3[%c0_3, %c0_4] : memref<1x128xf32, #tpu.memory_space<vmem>>, vector<1x128xf32>
    %5 = vector.broadcast %4 : vector<1x128xf32> to vector<16x128xf32>
    %6 = arith.addf %3, %5 : vector<16x128xf32>
    %cst_5 = arith.constant 0.000000e+00 : f32
    %7 = vector.broadcast %cst_5 : f32 to vector<16x128xf32>
    %8 = arith.maximumf %6, %7 : vector<16x128xf32>
    %9 = arith.truncf %8 : vector<16x128xf32> to vector<16x128xbf16>
    %c0_6 = arith.constant 0 : index
    %c0_7 = arith.constant 0 : index
    %10 = vector.load %arg4[%c0_6, %c0_7] : memref<128x128xbf16, #tpu.memory_space<vmem>>, vector<128x128xbf16>
    %cst_8 = arith.constant dense<0.000000e+00> : vector<16x128xf32>
    %11 = tpu.matmul %9, %10, %cst_8 {dimension_numbers = #tpu.dot_dimension_numbers<[1], [0], [0], [1], [0, 0, 1, 1], [], []>} : vector<16x128xbf16>, vector<128x128xbf16>, vector<16x128xf32> -> vector<16x128xf32>
    %c0_9 = arith.constant 0 : index
    %c0_10 = arith.constant 0 : index
    %12 = vector.load %arg5[%c0_9, %c0_10] : memref<1x128xf32, #tpu.memory_space<vmem>>, vector<1x128xf32>
    %13 = vector.broadcast %12 : vector<1x128xf32> to vector<16x128xf32>
    %14 = arith.addf %11, %13 : vector<16x128xf32>
    %15 = arith.addf %14, %0 : vector<16x128xf32>
    %c0_11 = arith.constant 0 : index
    %c0_12 = arith.constant 0 : index
    %16 = vector.load %arg6[%c0_11, %c0_12] : memref<16x128xf32, #tpu.memory_space<vmem>>, vector<16x128xf32>
    tpu.vector_store %arg6[%c0_11, %c0_12], %15 {strides = array<i32>} : memref<16x128xf32, #tpu.memory_space<vmem>>, vector<16x128xf32>,
    return
  }
  func.func @transform_0(%arg0: i32) -> (i32, i32) {
    %c0_i32 = arith.constant 0 : i32
    %c0_i32_0 = arith.constant 0 : i32
    return %arg0, %c0_i32 : i32, i32
  }
  func.func @transform_1(%arg0: i32) -> (i32, i32) {
    %c0_i32 = arith.constant 0 : i32
    %c0_i32_0 = arith.constant 0 : i32
    %c0_i32_1 = arith.constant 0 : i32
    return %c0_i32, %c0_i32_0 : i32, i32
  }
  func.func @transform_2(%arg0: i32) -> (i32, i32) {
    %c0_i32 = arith.constant 0 : i32
    %c0_i32_0 = arith.constant 0 : i32
    %c0_i32_1 = arith.constant 0 : i32
    return %c0_i32, %c0_i32_0 : i32, i32
  }
  func.func @transform_3(%arg0: i32) -> (i32, i32) {
    %c0_i32 = arith.constant 0 : i32
    %c0_i32_0 = arith.constant 0 : i32
    %c0_i32_1 = arith.constant 0 : i32
    return %c0_i32, %c0_i32_0 : i32, i32
  }
  func.func @transform_4(%arg0: i32) -> (i32, i32) {
    %c0_i32 = arith.constant 0 : i32
    %c0_i32_0 = arith.constant 0 : i32
    %c0_i32_1 = arith.constant 0 : i32
    return %c0_i32, %c0_i32_0 : i32, i32
  }
  func.func @transform_5(%arg0: i32) -> (i32, i32) {
    %c0_i32 = arith.constant 0 : i32
    %c0_i32_0 = arith.constant 0 : i32
    return %arg0, %c0_i32 : i32, i32
  }
}

</mosaic_0001>

<bundles_post_ra>
// kernel: tpu_custom_call.1
= control target key start
LH: loop header
LB: loop body
LE: loop exit
PB: predicated region body
PF: predicated region fallthrough
CT: control target
= control target key end

     0   :  { %10 = vsyncpa [#allocation3], 0  ;;  %s617_s0 = inlined_call_operand.hbm [shape: f32[16,128], index: 0, kind: input, shape index: {}]   ;;  %s618_s1 = inlined_call_operand.hbm [shape: bf16[128,128], index: 1, kind: input, shape index: {}]   ;;  %s619_s2 = inlined_call_operand.vmem [shape: f32[1,128], index: 2, kind: input, shape index: {}]   ;;  %s620_s3 = inlined_call_operand.hbm [shape: bf16[128,128], index: 3, kind: input, shape index: {}]   ;;  %s621_s4 = inlined_call_operand.vmem [shape: f32[1,128], index: 4, kind: input, shape index: {}]   ;;  %s622_s5 = inlined_call_operand.hbm [shape: f32[16,128], index: 5, kind: output, shape index: {}]  }
   0x1   :  { %11 = vsyncpa [#allocation6], 0 }
   0x2   :  { %12 = vsyncpa [#allocation4], 0  ;;  %s511_s18 = smov [#allocation5]   ;;  %s417_s22 = scalar_lea.hbm %s618_s1, 1024 }
   0x3   :  { %s30_s19 = sshll.u32 %s511_s18, 4  ;;  %p418_p0 = scmp.ne.s32.totalorder %s618_s1, %s417_s22  ;;  %s31_s19 = int_to_ptr.vmem [resolvable:$true] %s30_s19 }
   0x4   :  { %p421_p1 = scmp.lt.u32.totalorder %s417_s22, %s618_s1 }
   0x6   :  { %p423_p2 = pnand %p421_p1, %p418_p0 }
   0x8   :  { %426 = shalt.err (!%p423_p2)
}
   0x9   :  { %s427_s27 = scalar_lea.vmem %s31_s19, 1024  ;;  %p432_p4 = scmp.lt.s32.totalorder %s31_s19, %s31_s19 }
   0xa   :  { %p428_p3 = scmp.ne.s32.totalorder %s31_s19, %s427_s27  ;;  %p433_p5 = scmp.lt.s32.totalorder %s427_s27, %s427_s27 }
   0xc   :  { %p434_p6 = por %p433_p5, %p432_p4 }
   0xe   :  { %p435_p7 = pnand %p434_p6, %p428_p3 }
  0x10   :  { %438 = shalt.err (!%p435_p7)
}
  0x11   :  { %s512_s28 = smov 64   ;;  %s513_s29 = smov 4  }
  0x12   :  { %36 = dma.hbm_to_vmem [thread:$0]  %s618_s1, 1024, %s31_s19, [#allocation6], %s512_s28, %s512_s28, %s513_s29  }
  0x13   :  { %s514_s7 = smov [#allocation2]   ;;  %s439_s11 = scalar_lea.hbm %s617_s0, 256 }
  0x14   :  { %s18_s8 = sshll.u32 %s514_s7, 4  ;;  %p440_p8 = scmp.ne.s32.totalorder %s617_s0, %s439_s11  ;;  %s19_s8 = int_to_ptr.vmem [resolvable:$true] %s18_s8 }
  0x15   :  { %p443_p9 = scmp.lt.u32.totalorder %s439_s11, %s617_s0 }
  0x17   :  { %p445_p10 = pnand %p443_p9, %p440_p8 }
  0x19   :  { %448 = shalt.err (!%p445_p10)
}
  0x1a   :  { %s449_s16 = scalar_lea.vmem %s19_s8, 256  ;;  %p454_p12 = scmp.lt.s32.totalorder %s19_s8, %s19_s8 }
  0x1b   :  { %p450_p11 = scmp.ne.s32.totalorder %s19_s8, %s449_s16  ;;  %p455_p13 = scmp.lt.s32.totalorder %s449_s16, %s449_s16 }
  0x1d   :  { %p456_p0 = por %p455_p13, %p454_p12 }
  0x1f   :  { %p457_p1 = pnand %p456_p0, %p450_p11 }
  0x21   :  { %460 = shalt.err (!%p457_p1)
}
  0x22   :  { %s515_s1 = smov 128   ;;  %s516_s17 = smov 8  }
  0x23   :  { %24 = dma.hbm_to_vmem [thread:$0]  %s617_s0, 256, %s19_s8, [#allocation3], %s515_s1, %s515_s1, %s516_s17  }
  0x24   :  { %s517_s20 = smov [#allocation7]   ;;  %s461_s24 = scalar_lea.hbm %s620_s3, 1024 }
  0x25   :  { %s44_s21 = sshll.u32 %s517_s20, 4  ;;  %p462_p2 = scmp.ne.s32.totalorder %s620_s3, %s461_s24  ;;  %s45_s21 = int_to_ptr.vmem [resolvable:$true] %s44_s21 }
  0x26   :  { %p465_p3 = scmp.lt.u32.totalorder %s461_s24, %s620_s3 }
  0x28   :  { %p467_p4 = pnand %p465_p3, %p462_p2 }
  0x2a   :  { %470 = shalt.err (!%p467_p4)
}
  0x2b   :  { %s471_s6 = scalar_lea.vmem %s45_s21, 1024  ;;  %p476_p6 = scmp.lt.s32.totalorder %s45_s21, %s45_s21 }
  0x2c   :  { %p472_p5 = scmp.ne.s32.totalorder %s45_s21, %s471_s6  ;;  %p477_p7 = scmp.lt.s32.totalorder %s471_s6, %s471_s6 }
  0x2e   :  { %p478_p8 = por %p477_p7, %p476_p6 }
  0x30   :  { %p479_p9 = pnand %p478_p8, %p472_p5 }
  0x32   :  { %482 = shalt.err (!%p479_p9)
}
  0x33   :  { %50 = dma.hbm_to_vmem [thread:$0]  %s620_s3, 1024, %s45_s21, [#allocation6], %s512_s28, %s512_s28, %s513_s29  }
  0x34   :  { %505 = dma.done.wait [#allocation3], 256  }
  0x35   :  { %506 = vsyncadd [#allocation3], 4294967040 }
  0x36   :  { %507 = dma.done.wait [#allocation6], 2048  }
  0x37   :  { %508 = vsyncadd [#allocation6], 4294965248  ;;  %v518_v0 = vmov 0.0   ;;  %vm519_vm0 = vmmov 0   ;;  %v401_v1 = vld [vmem:[#allocation5] sm:$0xff]   ;;  %v402_v2 = vld [vmem:[#allocation5 + $0x8] sm:$0xff]  }
  0x38   :  { %351 = vmatprep.subr.bf16.mxu0 %v518_v0  ;;  %367 = vmatprep.mubr.msk.bf16.mxu0 %vm519_vm0, %v518_v0  ;;  %v403_v3 = vld [vmem:[#allocation5 + $0x10] sm:$0xff]   ;;  %v409_v4 = vld [vmem:[#allocation7] sm:$0xff]   ;;  %v404_v5 = vld [vmem:[#allocation5 + $0x18] sm:$0xff]   ;;  %s520_s9 = smov [#allocation8]  }
  0x39   :  { %371 = vmatprep.subr.bf16.mxu1 %v518_v0  ;;  %387 = vmatprep.mubr.msk.bf16.mxu1 %vm519_vm0, %v518_v0  ;;  %v410_v6 = vld [vmem:[#allocation7 + $0x8] sm:$0xff]   ;;  %v405_v7 = vld [vmem:[#allocation5 + $0x20] sm:$0xff]   ;;  %v411_v8 = vld [vmem:[#allocation7 + $0x10] sm:$0xff]  }
  0x3a   :  { %352 = vmatpush3.bf16.msra.mxu0 %v401_v1  ;;  %372 = vmatpush3.bf16.msra.mxu1 %v409_v4  ;;  %v406_v9 = vld [vmem:[#allocation5 + $0x28] sm:$0xff]   ;;  %v412_v10 = vld [vmem:[#allocation7 + $0x18] sm:$0xff]   ;;  %v407_v11 = vld [vmem:[#allocation5 + $0x30] sm:$0xff]  }
  0x3b   :  { %353 = vmatprep.subr.bf16.mxu0 %v518_v0  ;;  %373 = vmatprep.subr.bf16.mxu1 %v518_v0  ;;  %v413_v12 = vld [vmem:[#allocation7 + $0x20] sm:$0xff]   ;;  %v408_v13 = vld [vmem:[#allocation5 + $0x38] sm:$0xff]   ;;  %v63_v14 = vld [vmem:[#allocation2] sm:$0xff] }
  0x3c   :  { %v64_v15 = vld [vmem:[#allocation2 + $0x8] sm:$0xff]  ;;  %v414_v16 = vld [vmem:[#allocation7 + $0x28] sm:$0xff]   ;;  %v415_v18 = vld [vmem:[#allocation7 + $0x30] sm:$0xff]  }
  0x3d   :  { %v65_v17 = vpack.c.bf16 %v64_v15, %v63_v14  ;;  %v416_v19 = vld [vmem:[#allocation7 + $0x38] sm:$0xff]   ;;  %v315_v20 = vld [vmem:[%s619_s2] ss:$0 sm:$0xff]  ;;  %s302_s2 = sshll.u32 %s520_s9, 4  ;;  %s303_s2 = int_to_ptr.vmem [resolvable:$true] %s302_s2 }
  0x3e   :  { %354 = vmatpush3.bf16.msra.mxu0 %v402_v2  ;;  %374 = vmatpush3.bf16.msra.mxu1 %v410_v6  ;;  %v324_v30 = vld [vmem:[%s621_s4] ss:$0 sm:$0xff]  ;;  %s483_s10 = scalar_lea.vmem %s303_s2, 256  ;;  %p488_p11 = scmp.lt.s32.totalorder %s303_s2, %s303_s2 }
  0x3f   :  { %355 = vmatprep.subr.bf16.mxu0 %v518_v0  ;;  %375 = vmatprep.subr.bf16.mxu1 %v518_v0  ;;  %p484_p10 = scmp.ne.s32.totalorder %s303_s2, %s483_s10  ;;  %p489_p12 = scmp.lt.s32.totalorder %s483_s10, %s483_s10 }
  0x41   :  { %p490_p13 = por %p489_p12, %p488_p11 }
  0x42   :  { %356 = vmatpush3.bf16.msra.mxu0 %v403_v3  ;;  %376 = vmatpush3.bf16.msra.mxu1 %v411_v8 }
  0x43   :  { %357 = vmatprep.subr.bf16.mxu0 %v518_v0  ;;  %377 = vmatprep.subr.bf16.mxu1 %v518_v0  ;;  %p491_p0 = pnand %p490_p13, %p484_p10 }
  0x46   :  { %358 = vmatpush3.bf16.msra.mxu0 %v404_v5  ;;  %378 = vmatpush3.bf16.msra.mxu1 %v412_v10 }
  0x47   :  { %359 = vmatprep.subr.bf16.mxu0 %v518_v0  ;;  %379 = vmatprep.subr.bf16.mxu1 %v518_v0 }
  0x4a   :  { %360 = vmatpush3.bf16.msra.mxu0 %v405_v7  ;;  %380 = vmatpush3.bf16.msra.mxu1 %v413_v12 }
  0x4b   :  { %361 = vmatprep.subr.bf16.mxu0 %v518_v0  ;;  %381 = vmatprep.subr.bf16.mxu1 %v518_v0 }
  0x4e   :  { %362 = vmatpush3.bf16.msra.mxu0 %v406_v9  ;;  %382 = vmatpush3.bf16.msra.mxu1 %v414_v16 }
  0x4f   :  { %363 = vmatprep.subr.bf16.mxu0 %v518_v0  ;;  %383 = vmatprep.subr.bf16.mxu1 %v518_v0 }
  0x52   :  { %364 = vmatpush3.bf16.msra.mxu0 %v407_v11  ;;  %384 = vmatpush3.bf16.msra.mxu1 %v415_v18 }
  0x53   :  { %365 = vmatprep.subr.bf16.mxu0 %v518_v0  ;;  %385 = vmatprep.subr.bf16.mxu1 %v518_v0 }
  0x56   :  { %366 = vmatpush3.bf16.msra.mxu0 %v408_v13  ;;  %386 = vmatpush3.bf16.msra.mxu1 %v416_v19 }
  0x59   :  { %368 = vmatmul.mubr.bf16.vlgmr.msra.gmra.mrb[0].mxu0 %v65_v17 }
 0x12c   :  { %v171_v21 = vpop.f32.mrb[0].mxu0 }
 0x12d   :  { %v172_v22 = vadd.f32 %v315_v20, %v171_v21  ;;  %v369_v23 = vpop.f32.mrb[1].mxu0 }
 0x12e   :  { %v174_v24 = vpop.f32.mrb[2].mxu0 }
 0x12f   :  { %v175_v25 = vadd.f32 %v315_v20, %v174_v24  ;;  %v370_v26 = vpop.f32.mrb[3].mxu0  ;;  %v178_v27 = vmax.f32 %v172_v22, 0.0 }
 0x131   :  { %v179_v28 = vmax.f32 %v175_v25, 0.0 }
 0x133   :  { %v180_v29 = vpack.c.bf16 %v179_v28, %v178_v27 }
 0x135   :  { %388 = vmatmul.mubr.bf16.vlgmr.msra.gmra.mrb[0].mxu1 %v180_v29 }
 0x208   :  { %v286_v31 = vpop.f32.mrb[0].mxu1 }
 0x209   :  { %v287_v32 = vadd.f32 %v324_v30, %v286_v31  ;;  %v389_v33 = vpop.f32.mrb[1].mxu1 }
 0x20a   :  { %v289_v34 = vpop.f32.mrb[2].mxu1 }
 0x20b   :  { %v293_v35 = vadd.f32 %v287_v32, %v63_v14  ;;  %v290_v36 = vadd.f32 %v324_v30, %v289_v34  ;;  %v390_v37 = vpop.f32.mrb[3].mxu1 }
 0x20d   :  { %295 = vst [vmem:[#allocation8] sm:$0xff] %v293_v35  ;;  %v294_v38 = vadd.f32 %v290_v36, %v64_v15 }
 0x20f   :  { %296 = vst [vmem:[#allocation8 + $0x8] sm:$0xff] %v294_v38 }
 0x210   :  { %494 = shalt.err (!%p491_p0)
}
 0x211   :  { %s495_s12 = scalar_lea.hbm %s622_s5, 256 }
 0x212   :  { %p496_p1 = scmp.ne.s32.totalorder %s622_s5, %s495_s12  ;;  %p499_p2 = scmp.lt.u32.totalorder %s495_s12, %s622_s5 }
 0x214   :  { %p501_p3 = pnand %p499_p2, %p496_p1 }
 0x216   :  { %504 = shalt.err (!%p501_p3)
}
 0x217   :  { %308 = dma.vmem_to_hbm [thread:$0]  %s303_s2, 256, %s622_s5, [#allocation4], %s515_s1, %s515_s1, %s516_s17  }
 0x218   :  { %509 = dma.done.wait [#allocation4], 256  }
 0x219   :  { %510 = vsyncadd [#allocation4], 4294967040 }
 0x21a   :  { %312 = vsyncpa [#allocation3], 1 }
 0x21b   :  { %313 = vsyncpa [#allocation6], 1 }
 0x21c   :  { %314 = vsyncpa [#allocation4], 1 }

</bundles_post_ra>
